<compile_context>
chip_gen: v7x
topology: tpu7x:2x2x1
jax: 0.10.0
libtpu: 0.0.40
codegen_flags: <defaults>
</compile_context>

<pallas_src>
import jax
import jax.numpy as jnp
from jax.experimental import pallas as pl
from jax.experimental.pallas import tpu as pltpu


def _round_up(x, m):
    return ((x + m - 1) // m) * m


_MAX_TILE_B = 1024  # multiple of 256 (fills the 256-wide MXU on v6e/v7x)


def _choose_tile_b(B):
    """Static (trace-time) batch-tile selection."""
    B8 = _round_up(B, 8)
    if B8 <= 256:
        # Small batch: one sublane-aligned tile. Per-step overhead is
        # irrelevant and splitting below ~256 rows/TC isn't worth the padding.
        return B8
    # Large batch: 256-row-multiple tiles, capped at half the padded batch so
    # the "parallel" grid axis always has >= 2 steps (v7x: both TensorCores
    # busy) and at _MAX_TILE_B to bound VMEM while amortizing the ~0.35 us
    # per-grid-step overhead (tile sweeps: 512+ rows -> ~85% of HBM roofline).
    half = _round_up((B8 + 1) // 2, 256)
    return int(min(_MAX_TILE_B, half))


def actor_kernel(x_ref, w1_ref, b1_ref, w2_ref, b2_ref, w3_ref, b3_ref,
                 scale_ref, bias_ref, out_ref):
    # One batch tile per grid step; weights/biases/scale are VMEM-resident
    # (constant block index -> no re-DMA between steps).
    x = x_ref[...].astype(jnp.bfloat16)

    # encoder layer 1: Linear + ReLU (bf16 MXU matmul, f32 accumulate/elementwise)
    h1 = jnp.dot(x, w1_ref[...], preferred_element_type=jnp.float32) + b1_ref[...]
    h1 = jnp.maximum(h1, 0.0)

    # encoder layer 2: Linear + ReLU
    h2 = jnp.dot(h1.astype(jnp.bfloat16), w2_ref[...],
                 preferred_element_type=jnp.float32) + b2_ref[...]
    h2 = jnp.maximum(h2, 0.0)

    # policy head: Linear + tanh, only the true action_dim columns
    a = jnp.dot(h2.astype(jnp.bfloat16), w3_ref[...],
                preferred_element_type=jnp.float32) + b3_ref[...]
    a = jnp.tanh(a)

    # rescale to action range and store (narrow, true-A output)
    out_ref[...] = a * scale_ref[...] + bias_ref[...]


def prepare_actor_params(w1, b1, w2, b2, w3, b3, action_scale, action_bias):
    """One-time parameter formatting. Call at init, NOT per forward pass.

    Weights -> bfloat16 [in, out]; biases / action scale / bias -> f32 [1, D].
    """
    def row(v, d):
        return jnp.asarray(v, jnp.float32).reshape(1, d)

    H1 = w1.shape[1]
    H2 = w2.shape[1]
    A = w3.shape[1]
    return (
        jnp.asarray(w1, jnp.bfloat16), row(b1, H1),
        jnp.asarray(w2, jnp.bfloat16), row(b2, H2),
        jnp.asarray(w3, jnp.bfloat16), row(b3, A),
        row(action_scale, A), row(action_bias, A),
    )


@jax.jit
def actor_forward(x, params):
    w1b, b1, w2b, b2, w3b, b3, scale, bias = params
    B, in_dim = x.shape
    A = w3b.shape[1]

    # ---- static batch tiling ----
    tile_b = _choose_tile_b(B)
    B_pad = _round_up(B, tile_b)
    x_p = x if B_pad == B else jnp.pad(x, ((0, B_pad - B), (0, 0)))
    n_tiles = B_pad // tile_b

    # Weights / biases / scale: constant block index -> DMA'd once, resident.
    resident = lambda arr: pl.BlockSpec(arr.shape, lambda i: (0, 0))

    out = pl.pallas_call(
        actor_kernel,
        out_shape=jax.ShapeDtypeStruct((B_pad, A), jnp.float32),
        grid=(n_tiles,),
        in_specs=[
            pl.BlockSpec((tile_b, in_dim), lambda i: (i, 0)),   # x (pipelined)
            resident(w1b), resident(b1),
            resident(w2b), resident(b2),
            resident(w3b), resident(b3),
            resident(scale), resident(bias),
        ],
        out_specs=pl.BlockSpec((tile_b, A), lambda i: (i, 0)),
        compiler_params=pltpu.CompilerParams(
            dimension_semantics=("parallel",)),   # v7x: split batch over 2 TCs
    )(x_p, w1b, b1, w2b, b2, w3b, b3, scale, bias)

    # Only batch-unpad (tiny, and a no-op when B is tile-aligned).
    return out if B_pad == B else out[:B]


def init_linear(key, fan_in, fan_out):
    """Deterministic init mimicking PyTorch nn.Linear default (U[-1/sqrt(fan_in), +])."""
    kw, kb = jax.random.split(key)
    bound = 1.0 / jnp.sqrt(jnp.float32(fan_in))
    w = jax.random.uniform(kw, (fan_in, fan_out), jnp.float32, -bound, bound)
    b = jax.random.uniform(kb, (1, fan_out), jnp.float32, -bound, bound)
    return w, b


def reference_forward_bf16(x, w1, b1, w2, b2, w3, b3, action_scale, action_bias):
    """Pure-JAX reference matching the kernel's dtype policy (bf16 matmuls, f32 elsewhere)."""
    f32 = jnp.float32
    h = jnp.maximum(jnp.dot(x.astype(jnp.bfloat16), w1.astype(jnp.bfloat16),
                            preferred_element_type=f32) + b1, 0.0)
    h = jnp.maximum(jnp.dot(h.astype(jnp.bfloat16), w2.astype(jnp.bfloat16),
                            preferred_element_type=f32) + b2, 0.0)
    a = jnp.tanh(jnp.dot(h.astype(jnp.bfloat16), w3.astype(jnp.bfloat16),
                         preferred_element_type=f32) + b3)
    return a * action_scale + action_bias


def reference_forward_f32(x, w1, b1, w2, b2, w3, b3, action_scale, action_bias):
    h = jnp.maximum(x @ w1 + b1, 0.0)
    h = jnp.maximum(h @ w2 + b2, 0.0)
    a = jnp.tanh(h @ w3 + b3)
    return a * action_scale + action_bias


if __name__ == "__main__":
    key = jax.random.PRNGKey(0)
    k_x, k_x2, k1, k2, k3 = jax.random.split(key, 5)

    # Small DMC-like env: flattened observation dim 24, action dim 6.
    IN_DIM, HIDDEN, ACT_DIM = 24, 256, 6

    w1, b1 = init_linear(k1, IN_DIM, HIDDEN)
    w2, b2 = init_linear(k2, HIDDEN, HIDDEN)
    w3, b3 = init_linear(k3, HIDDEN, ACT_DIM)

    # action space low = -2, high = 1  ->  scale = 1.5, bias = -0.5
    action_low = jnp.full((1, ACT_DIM), -2.0, jnp.float32)
    action_high = jnp.full((1, ACT_DIM), 1.0, jnp.float32)
    action_scale = (action_high - action_low) / 2.0
    action_bias = (action_high + action_low) / 2.0

    # One-time parameter prep (hoisted out of the per-call forward).
    params = prepare_actor_params(w1, b1, w2, b2, w3, b3, action_scale, action_bias)
    params = jax.block_until_ready(params)

    ok = True
    # Two batch sizes: the tiny rollout case (single tile) and a batch that
    # exercises multi-tile + batch padding (B=272 -> tile 256, 2 grid steps).
    for B, kx in ((8, k_x), (272, k_x2)):
        x = jax.random.normal(kx, (B, IN_DIM), jnp.float32)
        out = jax.block_until_ready(actor_forward(x, params))
        assert out.shape == (B, ACT_DIM)

        # Tight check vs. a JAX reference using the same bf16-matmul policy.
        ref_bf16 = reference_forward_bf16(x, w1, b1, w2, b2, w3, b3,
                                          action_scale, action_bias)
        ok &= bool(jnp.allclose(out, ref_bf16, atol=2e-3, rtol=2e-3))

        # Looser sanity check vs. the full-f32 reference (bf16 weight rounding).
        ref_f32 = reference_forward_f32(x, w1, b1, w2, b2, w3, b3,
                                        action_scale, action_bias)
        ok &= bool(jnp.allclose(out, ref_f32, atol=5e-2, rtol=5e-2))

    assert ok, "kernel output mismatch vs JAX references"
    print("KERNEL_OK")
</pallas_src>

<mosaic_0001>
module attributes {stable_mosaic.version = 11 : i64} {
  func.func @actor_kernel(%arg0: i32, %arg1: memref<8x24xf32, #tpu.memory_space<vmem>>, %arg2: memref<24x256xbf16, #tpu.memory_space<vmem>>, %arg3: memref<1x256xf32, #tpu.memory_space<vmem>>, %arg4: memref<256x256xbf16, #tpu.memory_space<vmem>>, %arg5: memref<1x256xf32, #tpu.memory_space<vmem>>, %arg6: memref<256x6xbf16, #tpu.memory_space<vmem>>, %arg7: memref<1x6xf32, #tpu.memory_space<vmem>>, %arg8: memref<1x6xf32, #tpu.memory_space<vmem>>, %arg9: memref<1x6xf32, #tpu.memory_space<vmem>>, %arg10: memref<8x6xf32, #tpu.memory_space<vmem>>) attributes {dimension_semantics = [#tpu.dimension_semantics<parallel>], iteration_bounds = array<i64: 1>, scalar_prefetch = 0 : i64, scratch_operands = 0 : i64, tpu.core_type = #tpu.core_type<tc>, window_params = [{transform_indices = @transform_0, window_bounds = array<i64: 8, 24>}, {pipeline_mode = #tpu.pipeline_mode<synchronous>, transform_indices = @transform_1, window_bounds = array<i64: 24, 256>}, {pipeline_mode = #tpu.pipeline_mode<synchronous>, transform_indices = @transform_2, window_bounds = array<i64: 1, 256>}, {pipeline_mode = #tpu.pipeline_mode<synchronous>, transform_indices = @transform_3, window_bounds = array<i64: 256, 256>}, {pipeline_mode = #tpu.pipeline_mode<synchronous>, transform_indices = @transform_4, window_bounds = array<i64: 1, 256>}, {pipeline_mode = #tpu.pipeline_mode<synchronous>, transform_indices = @transform_5, window_bounds = array<i64: 256, 6>}, {pipeline_mode = #tpu.pipeline_mode<synchronous>, transform_indices = @transform_6, window_bounds = array<i64: 1, 6>}, {pipeline_mode = #tpu.pipeline_mode<synchronous>, transform_indices = @transform_7, window_bounds = array<i64: 1, 6>}, {pipeline_mode = #tpu.pipeline_mode<synchronous>, transform_indices = @transform_8, window_bounds = array<i64: 1, 6>}, {transform_indices = @transform_9, window_bounds = array<i64: 8, 6>}]} {
    %c0 = arith.constant 0 : index
    %c0_0 = arith.constant 0 : index
    %0 = vector.load %arg1[%c0, %c0_0] : memref<8x24xf32, #tpu.memory_space<vmem>>, vector<8x24xf32>
    %1 = arith.truncf %0 : vector<8x24xf32> to vector<8x24xbf16>
    %c0_1 = arith.constant 0 : index
    %c0_2 = arith.constant 0 : index
    %2 = vector.load %arg2[%c0_1, %c0_2] : memref<24x256xbf16, #tpu.memory_space<vmem>>, vector<24x256xbf16>
    %cst = arith.constant dense<0.000000e+00> : vector<8x256xf32>
    %3 = tpu.matmul %1, %2, %cst {dimension_numbers = #tpu.dot_dimension_numbers<[1], [0], [0], [1], [0, 0, 1, 1], [], []>} : vector<8x24xbf16>, vector<24x256xbf16>, vector<8x256xf32> -> vector<8x256xf32>
    %c0_3 = arith.constant 0 : index
    %c0_4 = arith.constant 0 : index
    %4 = vector.load %arg3[%c0_3, %c0_4] : memref<1x256xf32, #tpu.memory_space<vmem>>, vector<1x256xf32>
    %5 = vector.broadcast %4 : vector<1x256xf32> to vector<8x256xf32>
    %6 = arith.addf %3, %5 : vector<8x256xf32>
    %cst_5 = arith.constant 0.000000e+00 : f32
    %7 = vector.broadcast %cst_5 : f32 to vector<8x256xf32>
    %8 = arith.maximumf %6, %7 : vector<8x256xf32>
    %9 = arith.truncf %8 : vector<8x256xf32> to vector<8x256xbf16>
    %c0_6 = arith.constant 0 : index
    %c0_7 = arith.constant 0 : index
    %10 = vector.load %arg4[%c0_6, %c0_7] : memref<256x256xbf16, #tpu.memory_space<vmem>>, vector<256x256xbf16>
    %cst_8 = arith.constant dense<0.000000e+00> : vector<8x256xf32>
    %11 = tpu.matmul %9, %10, %cst_8 {dimension_numbers = #tpu.dot_dimension_numbers<[1], [0], [0], [1], [0, 0, 1, 1], [], []>} : vector<8x256xbf16>, vector<256x256xbf16>, vector<8x256xf32> -> vector<8x256xf32>
    %c0_9 = arith.constant 0 : index
    %c0_10 = arith.constant 0 : index
    %12 = vector.load %arg5[%c0_9, %c0_10] : memref<1x256xf32, #tpu.memory_space<vmem>>, vector<1x256xf32>
    %13 = vector.broadcast %12 : vector<1x256xf32> to vector<8x256xf32>
    %14 = arith.addf %11, %13 : vector<8x256xf32>
    %cst_11 = arith.constant 0.000000e+00 : f32
    %15 = vector.broadcast %cst_11 : f32 to vector<8x256xf32>
    %16 = arith.maximumf %14, %15 : vector<8x256xf32>
    %17 = arith.truncf %16 : vector<8x256xf32> to vector<8x256xbf16>
    %c0_12 = arith.constant 0 : index
    %c0_13 = arith.constant 0 : index
    %18 = vector.load %arg6[%c0_12, %c0_13] : memref<256x6xbf16, #tpu.memory_space<vmem>>, vector<256x6xbf16>
    %cst_14 = arith.constant dense<0.000000e+00> : vector<8x6xf32>
    %19 = tpu.matmul %17, %18, %cst_14 {dimension_numbers = #tpu.dot_dimension_numbers<[1], [0], [0], [1], [0, 0, 1, 1], [], []>} : vector<8x256xbf16>, vector<256x6xbf16>, vector<8x6xf32> -> vector<8x6xf32>
    %c0_15 = arith.constant 0 : index
    %c0_16 = arith.constant 0 : index
    %20 = vector.load %arg7[%c0_15, %c0_16] : memref<1x6xf32, #tpu.memory_space<vmem>>, vector<1x6xf32>
    %21 = vector.broadcast %20 : vector<1x6xf32> to vector<8x6xf32>
    %22 = arith.addf %19, %21 : vector<8x6xf32>
    %23 = math.tanh %22 : vector<8x6xf32>
    %c0_17 = arith.constant 0 : index
    %c0_18 = arith.constant 0 : index
    %24 = vector.load %arg8[%c0_17, %c0_18] : memref<1x6xf32, #tpu.memory_space<vmem>>, vector<1x6xf32>
    %25 = vector.broadcast %24 : vector<1x6xf32> to vector<8x6xf32>
    %26 = arith.mulf %23, %25 : vector<8x6xf32>
    %c0_19 = arith.constant 0 : index
    %c0_20 = arith.constant 0 : index
    %27 = vector.load %arg9[%c0_19, %c0_20] : memref<1x6xf32, #tpu.memory_space<vmem>>, vector<1x6xf32>
    %28 = vector.broadcast %27 : vector<1x6xf32> to vector<8x6xf32>
    %29 = arith.addf %26, %28 : vector<8x6xf32>
    %c0_21 = arith.constant 0 : index
    %c0_22 = arith.constant 0 : index
    %30 = vector.load %arg10[%c0_21, %c0_22] : memref<8x6xf32, #tpu.memory_space<vmem>>, vector<8x6xf32>
    tpu.vector_store %arg10[%c0_21, %c0_22], %29 {strides = array<i32>} : memref<8x6xf32, #tpu.memory_space<vmem>>, vector<8x6xf32>,
    return
  }
  func.func @transform_0(%arg0: i32) -> (i32, i32) {
    %c0_i32 = arith.constant 0 : i32
    %c0_i32_0 = arith.constant 0 : i32
    return %arg0, %c0_i32 : i32, i32
  }
  func.func @transform_1(%arg0: i32) -> (i32, i32) {
    %c0_i32 = arith.constant 0 : i32
    %c0_i32_0 = arith.constant 0 : i32
    %c0_i32_1 = arith.constant 0 : i32
    return %c0_i32, %c0_i32_0 : i32, i32
  }
  func.func @transform_2(%arg0: i32) -> (i32, i32) {
    %c0_i32 = arith.constant 0 : i32
    %c0_i32_0 = arith.constant 0 : i32
    %c0_i32_1 = arith.constant 0 : i32
    return %c0_i32, %c0_i32_0 : i32, i32
  }
  func.func @transform_3(%arg0: i32) -> (i32, i32) {
    %c0_i32 = arith.constant 0 : i32
    %c0_i32_0 = arith.constant 0 : i32
    %c0_i32_1 = arith.constant 0 : i32
    return %c0_i32, %c0_i32_0 : i32, i32
  }
  func.func @transform_4(%arg0: i32) -> (i32, i32) {
    %c0_i32 = arith.constant 0 : i32
    %c0_i32_0 = arith.constant 0 : i32
    %c0_i32_1 = arith.constant 0 : i32
    return %c0_i32, %c0_i32_0 : i32, i32
  }
  func.func @transform_5(%arg0: i32) -> (i32, i32) {
    %c0_i32 = arith.constant 0 : i32
    %c0_i32_0 = arith.constant 0 : i32
    %c0_i32_1 = arith.constant 0 : i32
    return %c0_i32, %c0_i32_0 : i32, i32
  }
  func.func @transform_6(%arg0: i32) -> (i32, i32) {
    %c0_i32 = arith.constant 0 : i32
    %c0_i32_0 = arith.constant 0 : i32
    %c0_i32_1 = arith.constant 0 : i32
    return %c0_i32, %c0_i32_0 : i32, i32
  }
  func.func @transform_7(%arg0: i32) -> (i32, i32) {
    %c0_i32 = arith.constant 0 : i32
    %c0_i32_0 = arith.constant 0 : i32
    %c0_i32_1 = arith.constant 0 : i32
    return %c0_i32, %c0_i32_0 : i32, i32
  }
  func.func @transform_8(%arg0: i32) -> (i32, i32) {
    %c0_i32 = arith.constant 0 : i32
    %c0_i32_0 = arith.constant 0 : i32
    %c0_i32_1 = arith.constant 0 : i32
    return %c0_i32, %c0_i32_0 : i32, i32
  }
  func.func @transform_9(%arg0: i32) -> (i32, i32) {
    %c0_i32 = arith.constant 0 : i32
    %c0_i32_0 = arith.constant 0 : i32
    return %arg0, %c0_i32 : i32, i32
  }
}

</mosaic_0001>

<bundles_post_ra>
// kernel: actor_forward.1
= control target key start
LH: loop header
LB: loop body
LE: loop exit
PB: predicated region body
PF: predicated region fallthrough
CT: control target
= control target key end

     0   :  { %14 = vsyncpa [#allocation3], 0  ;;  %s951_s0 = inlined_call_operand.vmem [shape: f32[8,24], index: 0, kind: input, shape index: {}]   ;;  %s952_s1 = inlined_call_operand.vmem [shape: bf16[24,256], index: 1, kind: input, shape index: {}]   ;;  %s953_s2 = inlined_call_operand.vmem [shape: f32[1,256], index: 2, kind: input, shape index: {}]   ;;  %s954_s3 = inlined_call_operand.hbm [shape: bf16[256,256], index: 3, kind: input, shape index: {}]   ;;  %s955_s4 = inlined_call_operand.vmem [shape: f32[1,256], index: 4, kind: input, shape index: {}]   ;;  %s956_s5 = inlined_call_operand.vmem [shape: bf16[256,6], index: 5, kind: input, shape index: {}]   ;;  %s957_s6 = inlined_call_operand.vmem [shape: f32[1,6], index: 6, kind: input, shape index: {}]   ;;  %s958_s7 = inlined_call_operand.vmem [shape: f32[1,6], index: 7, kind: input, shape index: {}]   ;;  %s959_s8 = inlined_call_operand.vmem [shape: f32[1,6], index: 8, kind: input, shape index: {}]   ;;  %s960_s9 = inlined_call_operand.hbm [shape: f32[8,6], index: 9, kind: output, shape index: {}]  }
   0x1   :  { %15 = vsyncpa [#allocation4], 0  ;;  %s797_s30 = smov [#allocation2]   ;;  %s749_s13 = scalar_lea.hbm %s954_s3, 4096 }
   0x2   :  { %s27_s10 = sshll.u32 %s797_s30, 4  ;;  %p750_p0 = scmp.ne.s32.totalorder %s954_s3, %s749_s13  ;;  %s28_s10 = int_to_ptr.vmem [resolvable:$true] %s27_s10 }
   0x3   :  { %p753_p1 = scmp.lt.u32.totalorder %s749_s13, %s954_s3 }
   0x5   :  { %p755_p2 = pnand %p753_p1, %p750_p0 }
   0x7   :  { %758 = shalt.err (!%p755_p2)
}
   0x8   :  { %s759_s18 = scalar_lea.vmem %s28_s10, 4096  ;;  %p764_p4 = scmp.lt.s32.totalorder %s28_s10, %s28_s10 }
   0x9   :  { %p760_p3 = scmp.ne.s32.totalorder %s28_s10, %s759_s18  ;;  %p765_p5 = scmp.lt.s32.totalorder %s759_s18, %s759_s18 }
   0xb   :  { %p766_p6 = por %p765_p5, %p764_p4 }
   0xd   :  { %p767_p7 = pnand %p766_p6, %p760_p3 }
   0xf   :  { %770 = shalt.err (!%p767_p7)
}
  0x10   :  { %s798_s19 = smov 128   ;;  %s799_s20 = smov 8  }
  0x11   :  { %33 = dma.hbm_to_vmem [thread:$0]  %s954_s3, 4096, %s28_s10, [#allocation3], %s798_s19, %s798_s19, %s799_s20  }
  0x12   :  { %793 = dma.done.wait [#allocation3], 4096  }
  0x13   :  { %794 = vsyncadd [#allocation3], 4294963200  ;;  %v800_v0 = vmov 0   ;;  %v678_v1 = vld [vmem:[%s952_s1 + $0x4] ss:$8 sps:$4 sm:$0xff]   ;;  %v52_v3 = vld [vmem:[%s952_s1 + $0x10] sm:$0xff]  ;;  %v55_v53 = vlaneseq }
  0x14   :  { %123 = vmatprep.mubr.bf16.mxu0 %v800_v0  ;;  %v680_v2 = vld [vmem:[%s952_s1] ss:$8 sps:$4 sm:$0xff]   ;;  %vm84_vm0 = vcmask 1043456   ;;  %91 = vmatprep.subr.bf16.mxu0 %v678_v1  ;;  %v597_v5 = vcombine.high %v52_v3, %v52_v3  ;;  %v596_v6 = vcombine.low %v52_v3, %v52_v3  ;;  %v683_v7 = vld [vmem:[#allocation2 + $0x4] ss:$8 sps:$4 sm:$0xff]   ;;  %vm80_vm1 = vcmask 195584  }
  0x15   :  { %v48_v4 = vld [vmem:[%s951_s0] sm:$0xff]  ;;  %92 = vmatpush1.bf16.msra.mxu0 %v680_v2  ;;  %340 = vmatprep.subr.bf16.mxu1 %v683_v7  ;;  %v686_v10 = vld [vmem:[#allocation2 + $0x14] ss:$8 sps:$4 sm:$0xff]   ;;  %v688_v11 = vld [vmem:[#allocation2 + $0x10] ss:$8 sps:$4 sm:$0xff]   ;;  %v56_v54 = vshrl.u32 %v55_v53, 7 }
  0x16   :  { %v685_v8 = vld [vmem:[#allocation2] ss:$8 sps:$4 sm:$0xff]   ;;  %598 = vmatprep.subr.msk.bf16.mxu0 %vm84_vm0, %v597_v5  ;;  %v86_v9 = vsel %vm84_vm0, %v596_v6, 0  ;;  %v49_v12 = vpack.c.bf16 %v48_v4, %v48_v4  ;;  %v689_v13 = vld [vmem:[#allocation2 + $0x24] ss:$8 sps:$4 sm:$0xff]   ;;  %v735_v45 = vld [vmem:[%s956_s5 + $0x50] sm:$0xff]  }
  0x17   :  { %341 = vmatpush1.bf16.msra.mxu1 %v685_v8  ;;  %v691_v14 = vld [vmem:[#allocation2 + $0x20] ss:$8 sps:$4 sm:$0xff]   ;;  %v692_v15 = vld [vmem:[#allocation2 + $0x34] ss:$8 sps:$4 sm:$0xff]   ;;  %v694_v16 = vld [vmem:[#allocation2 + $0x30] ss:$8 sps:$4 sm:$0xff]  }
  0x18   :  { %342 = vmatprep.subr.bf16.mxu1 %v686_v10  ;;  %v695_v17 = vld [vmem:[#allocation2 + $0x44] ss:$8 sps:$4 sm:$0xff]   ;;  %v697_v18 = vld [vmem:[#allocation2 + $0x40] ss:$8 sps:$4 sm:$0xff]   ;;  %v698_v19 = vld [vmem:[#allocation2 + $0x54] ss:$8 sps:$4 sm:$0xff]  }
  0x19   :  { %94 = vmatpush1.bf16.msra.mxu0 %v86_v9  ;;  %v700_v20 = vld [vmem:[#allocation2 + $0x50] ss:$8 sps:$4 sm:$0xff]   ;;  %v701_v21 = vld [vmem:[#allocation2 + $0x64] ss:$8 sps:$4 sm:$0xff]   ;;  %v703_v22 = vld [vmem:[#allocation2 + $0x60] ss:$8 sps:$4 sm:$0xff]  }
  0x1a   :  { %v704_v23 = vld [vmem:[#allocation2 + $0x74] ss:$8 sps:$4 sm:$0xff]   ;;  %v706_v24 = vld [vmem:[#allocation2 + $0x70] ss:$8 sps:$4 sm:$0xff]   ;;  %v707_v25 = vld [vmem:[#allocation2 + $0x84] ss:$8 sps:$4 sm:$0xff]  }
  0x1b   :  { %343 = vmatpush1.bf16.msra.mxu1 %v688_v11  ;;  %v709_v26 = vld [vmem:[#allocation2 + $0x80] ss:$8 sps:$4 sm:$0xff]   ;;  %v710_v27 = vld [vmem:[#allocation2 + $0x94] ss:$8 sps:$4 sm:$0xff]   ;;  %v712_v28 = vld [vmem:[#allocation2 + $0x90] ss:$8 sps:$4 sm:$0xff]  }
  0x1c   :  { %599 = vmatmul.mubr.msk.bf16.vlgmr.msra.gmra.mrb[0].mxu0 %vm80_vm1, %v49_v12  ;;  %344 = vmatprep.subr.bf16.mxu1 %v689_v13  ;;  %v713_v29 = vld [vmem:[#allocation2 + $0xa4] ss:$8 sps:$4 sm:$0xff]   ;;  %v715_v30 = vld [vmem:[#allocation2 + $0xa0] ss:$8 sps:$4 sm:$0xff]   ;;  %v716_v31 = vld [vmem:[#allocation2 + $0xb4] ss:$8 sps:$4 sm:$0xff]  }
  0x1d   :  { %v718_v32 = vld [vmem:[#allocation2 + $0xb0] ss:$8 sps:$4 sm:$0xff]   ;;  %v719_v33 = vld [vmem:[#allocation2 + $0xc4] ss:$8 sps:$4 sm:$0xff]   ;;  %v721_v34 = vld [vmem:[#allocation2 + $0xc0] ss:$8 sps:$4 sm:$0xff]  }
  0x1e   :  { %v722_v35 = vld [vmem:[#allocation2 + $0xd4] ss:$8 sps:$4 sm:$0xff]   ;;  %v724_v36 = vld [vmem:[#allocation2 + $0xd0] ss:$8 sps:$4 sm:$0xff]   ;;  %v725_v37 = vld [vmem:[#allocation2 + $0xe4] ss:$8 sps:$4 sm:$0xff]  }
  0x1f   :  { %345 = vmatpush1.bf16.msra.mxu1 %v691_v14  ;;  %v727_v38 = vld [vmem:[#allocation2 + $0xe0] ss:$8 sps:$4 sm:$0xff]   ;;  %v728_v39 = vld [vmem:[#allocation2 + $0xf4] ss:$8 sps:$4 sm:$0xff]   ;;  %v730_v40 = vld [vmem:[#allocation2 + $0xf0] ss:$8 sps:$4 sm:$0xff]  }
  0x20   :  { %346 = vmatprep.subr.bf16.mxu1 %v692_v15  ;;  %v731_v41 = vld [vmem:[%s956_s5 + $0x40] sm:$0xff]   ;;  %v733_v43 = vld [vmem:[%s956_s5 + $0x48] sm:$0xff]   ;;  %v736_v46 = vld [vmem:[%s956_s5 + $0x10] sm:$0xff]   ;;  %v57_v55 = vsub.s32 0, %v56_v54  ;;  %v61_v57 = vsub.s32 1, %v56_v54  ;;  %s801_s22 = smov [#allocation5]  }
  0x21   :  { %v732_v42 = vld [vmem:[%s956_s5] sm:$0xff]   ;;  %651 = vmatprep.subr.bf16.mxu0 %v731_v41  ;;  %v734_v44 = vld [vmem:[%s956_s5 + $0x8] sm:$0xff]   ;;  %v737_v47 = vld [vmem:[%s956_s5 + $0x58] sm:$0xff]   ;;  %s585_s23 = sshll.u32 %s801_s22, 4  ;;  %vm577_vm2 = vcmask 48128   ;;  %s586_s23 = int_to_ptr.vmem [resolvable:$true] %s585_s23 }
  0x22   :  { %652 = vmatpush3.bf16.msra.mxu0 %v732_v42  ;;  %v738_v48 = vld [vmem:[%s956_s5 + $0x18] sm:$0xff]   ;;  %v739_v49 = vld [vmem:[%s956_s5 + $0x60] sm:$0xff]   ;;  %v741_v51 = vld [vmem:[%s956_s5 + $0x68] sm:$0xff]   ;;  %p776_p9 = scmp.lt.s32.totalorder %s586_s23, %s586_s23 }
  0x23   :  { %347 = vmatpush1.bf16.msra.mxu1 %v694_v16  ;;  %653 = vmatprep.subr.bf16.mxu0 %v733_v43  ;;  %v740_v50 = vld [vmem:[%s956_s5 + $0x20] sm:$0xff]   ;;  %v742_v52 = vld [vmem:[%s956_s5 + $0x28] sm:$0xff]   ;;  %v743_v6 = vld [vmem:[%s956_s5 + $0x70] sm:$0xff]  }
  0x24   :  { %348 = vmatprep.subr.bf16.mxu1 %v695_v17  ;;  %v53_v56 = vld [vmem:[%s953_s2] sm:$0x3]  ;;  %v744_v7 = vld [vmem:[%s956_s5 + $0x30] sm:$0xff]   ;;  %v745_v8 = vld [vmem:[%s956_s5 + $0x78] sm:$0xff]  }
  0x25   :  { %v58_v58 = vrot.slane %v53_v56, %v57_v55  ;;  %v62_v59 = vrot.slane %v53_v56, %v61_v57  ;;  %v746_v9 = vld [vmem:[%s956_s5 + $0x38] sm:$0xff]   ;;  %v168_v10 = vld [vmem:[%s955_s4] sm:$0x3] }
  0x26   :  { %654 = vmatpush3.bf16.msra.mxu0 %v734_v44  ;;  %v173_v11 = vrot.slane %v168_v10, %v57_v55  ;;  %v177_v12 = vrot.slane %v168_v10, %v61_v57 }
  0x27   :  { %349 = vmatpush1.bf16.msra.mxu1 %v697_v18  ;;  %655 = vmatprep.subr.bf16.mxu0 %v735_v45 }
  0x28   :  { %350 = vmatprep.subr.bf16.mxu1 %v698_v19 }
  0x2a   :  { %656 = vmatpush3.bf16.msra.mxu0 %v736_v46 }
  0x2b   :  { %351 = vmatpush1.bf16.msra.mxu1 %v700_v20  ;;  %657 = vmatprep.subr.bf16.mxu0 %v737_v47 }
  0x2c   :  { %352 = vmatprep.subr.bf16.mxu1 %v701_v21 }
  0x2e   :  { %658 = vmatpush3.bf16.msra.mxu0 %v738_v48 }
  0x2f   :  { %353 = vmatpush1.bf16.msra.mxu1 %v703_v22  ;;  %659 = vmatprep.subr.bf16.mxu0 %v739_v49 }
  0x30   :  { %354 = vmatprep.subr.bf16.mxu1 %v704_v23 }
  0x32   :  { %660 = vmatpush3.bf16.msra.mxu0 %v740_v50 }
  0x33   :  { %355 = vmatpush1.bf16.msra.mxu1 %v706_v24  ;;  %661 = vmatprep.subr.bf16.mxu0 %v741_v51  ;;  %v632_v24 = vld [vmem:[%s957_s6] ss:$0 sm:$0xff]  ;;  %s771_s6 = scalar_lea.vmem %s586_s23, 128 }
  0x34   :  { %356 = vmatprep.subr.bf16.mxu1 %v707_v25  ;;  %p772_p8 = scmp.ne.s32.totalorder %s586_s23, %s771_s6  ;;  %p777_p10 = scmp.lt.s32.totalorder %s771_s6, %s771_s6 }
  0x36   :  { %662 = vmatpush3.bf16.msra.mxu0 %v742_v52  ;;  %p778_p11 = por %p777_p10, %p776_p9 }
  0x37   :  { %357 = vmatpush1.bf16.msra.mxu1 %v709_v26  ;;  %663 = vmatprep.subr.bf16.mxu0 %v743_v6 }
  0x38   :  { %358 = vmatprep.subr.bf16.mxu1 %v710_v27  ;;  %p779_p12 = pnand %p778_p11, %p772_p8 }
  0x3a   :  { %664 = vmatpush3.bf16.msra.mxu0 %v744_v7 }
  0x3b   :  { %359 = vmatpush1.bf16.msra.mxu1 %v712_v28  ;;  %665 = vmatprep.subr.bf16.mxu0 %v745_v8 }
  0x3c   :  { %360 = vmatprep.subr.bf16.mxu1 %v713_v29 }
  0x3e   :  { %666 = vmatpush3.bf16.msra.mxu0 %v746_v9 }
  0x3f   :  { %361 = vmatpush1.bf16.msra.mxu1 %v715_v30  ;;  %v649_v30 = vld [vmem:[%s958_s7] ss:$0 sm:$0xff] }
  0x40   :  { %362 = vmatprep.subr.bf16.mxu1 %v716_v31 }
  0x43   :  { %363 = vmatpush1.bf16.msra.mxu1 %v718_v32  ;;  %v650_v32 = vld [vmem:[%s959_s8] ss:$0 sm:$0xff] }
  0x44   :  { %364 = vmatprep.subr.bf16.mxu1 %v719_v33 }
  0x47   :  { %365 = vmatpush1.bf16.msra.mxu1 %v721_v34 }
  0x48   :  { %366 = vmatprep.subr.bf16.mxu1 %v722_v35 }
  0x4b   :  { %367 = vmatpush1.bf16.msra.mxu1 %v724_v36 }
  0x4c   :  { %368 = vmatprep.subr.bf16.mxu1 %v725_v37 }
  0x4f   :  { %369 = vmatpush1.bf16.msra.mxu1 %v727_v38 }
  0x50   :  { %370 = vmatprep.subr.bf16.mxu1 %v728_v39 }
  0x53   :  { %371 = vmatpush1.bf16.msra.mxu1 %v730_v40 }
  0xef   :  { %v125_v60 = vpop.f32.mrb[0].mxu0 }
  0xf0   :  { %v126_v61 = vadd.f32 %v125_v60, %v58_v58  ;;  %v127_v62 = vpop.f32.mrb[1].mxu0 }
  0xf1   :  { %v128_v63 = vadd.f32 %v127_v62, %v62_v59  ;;  %v129_v0 = vpop.f32.mrb[2].mxu0 }
  0xf2   :  { %v132_v1 = vmax.f32 %v126_v61, 0.0  ;;  %v130_v2 = vpop.f32.mrb[3].mxu0 }
  0xf3   :  { %v133_v3 = vmax.f32 %v128_v63, 0.0 }
  0xf4   :  { %v134_v5 = vpack.c.bf16 %v132_v1, %v132_v1 }
  0xf5   :  { %v135_v4 = vpack.c.bf16 %v133_v3, %v133_v3 }
  0xf7   :  { %372 = vmatprep.mubr.bf16.mxu1 %v135_v4 }
  0xf8   :  { %373 = vmatmul.mubr.bf16.vlgmr.msra.gmra.mrb[0].mxu1 %v134_v5 }
 0x1cb   :  { %v374_v13 = vpop.f32.mrb[0].mxu1 }
 0x1cc   :  { %v375_v14 = vadd.f32 %v374_v13, %v173_v11  ;;  %v376_v15 = vpop.f32.mrb[1].mxu1 }
 0x1cd   :  { %v377_v16 = vadd.f32 %v376_v15, %v177_v12  ;;  %v378_v17 = vpop.f32.mrb[2].mxu1 }
 0x1ce   :  { %v381_v18 = vmax.f32 %v375_v14, 0.0  ;;  %v379_v19 = vpop.f32.mrb[3].mxu1 }
 0x1cf   :  { %v382_v20 = vmax.f32 %v377_v16, 0.0 }
 0x1d0   :  { %v383_v22 = vpack.c.bf16 %v381_v18, %v381_v18 }
 0x1d1   :  { %v384_v21 = vpack.c.bf16 %v382_v20, %v382_v20 }
 0x1d3   :  { %552 = vmatprep.mubr.bf16.mxu0 %v384_v21 }
 0x1d4   :  { %553 = vmatmul.mubr.bf16.vlgmr.msra.gmra.mrb[4].mxu0 %v383_v22 }
 0x2a7   :  { %v667_v23 = vpop.f32.mrb[4].mxu0 }
 0x2a8   :  { %v668_v25 = vpop.f32.mrb[5].mxu0 }
 0x2a9   :  { %v669_v26 = vadd.f32 %v668_v25, %v667_v23  ;;  %v670_v27 = vpop.f32.mrb[6].mxu0 }
 0x2aa   :  { %v671_v28 = vpop.f32.mrb[7].mxu0 }
 0x2ab   :  { %v555_v29 = vadd.f32 %v669_v26, %v632_v24 }
 0x2ad   :  { %747 = vtanh.f32 %v555_v29 }
 0x2b7   :  { %v748_v31 = vpop.eup %747 }
 0x2b8   :  { %v568_v33 = vmul.f32 %v748_v31, %v649_v30 }
 0x2ba   :  { %v576_v34 = vadd.f32 %v650_v32, %v568_v33 }
 0x2bc   :  { %578 = vst.msk [vmem:[#allocation5] sm:$0xff] %vm577_vm2, %v576_v34 }
 0x2bd   :  { %782 = shalt.err (!%p779_p12)
}
 0x2be   :  { %s783_s25 = scalar_lea.hbm %s960_s9, 128 }
 0x2bf   :  { %p784_p13 = scmp.ne.s32.totalorder %s960_s9, %s783_s25  ;;  %p787_p0 = scmp.lt.u32.totalorder %s783_s25, %s960_s9 }
 0x2c1   :  { %p789_p1 = pnand %p787_p0, %p784_p13 }
 0x2c3   :  { %792 = shalt.err (!%p789_p1)
}
 0x2c4   :  { %588 = dma.vmem_to_hbm [thread:$0]  %s586_s23, 128, %s960_s9, [#allocation4]  }
 0x2c5   :  { %795 = dma.done.wait [#allocation4], 128  }
 0x2c6   :  { %796 = vsyncadd [#allocation4], 4294967168 }
 0x2c7   :  { %592 = vsyncpa [#allocation3], 1 }
 0x2c8   :  { %593 = vsyncpa [#allocation4], 1 }

</bundles_post_ra>
